<compile_context>
chip_gen: v5e
topology: v5e:2x2
jax: 0.10.0
libtpu: 0.0.40
codegen_flags: <defaults>
</compile_context>

<pallas_src>
import jax
import jax.numpy as jnp
from jax.experimental import pallas as pl
from jax.experimental.pallas import tpu as pltpu

DATA_DIM = 2
HIDDEN_DIM = 64
T_STEPS = 100            # diffusion steps (embedding-table rows)
LANES = 128              # vreg/MXU lane width; K of the fused layer-1 matmul
assert DATA_DIM + T_STEPS <= LANES

# Packed-weight slab row layout (all matmul operands start on 8-aligned rows).
W1_ROW = 0                          # rows [0, 128):   [W1x ; emb_fused ; 0]
W2_ROW = LANES                      # rows [128, 192): W2
W3_ROW = W2_ROW + HIDDEN_DIM        # rows [192, 256): W3 (cols 0:DATA_DIM used)
B2_ROW = W3_ROW + HIDDEN_DIM        # row  256:        b2
B3_ROW = B2_ROW + 1                 # row  257:        b3 (cols 0:DATA_DIM used)
SLAB_ROWS = ((B3_ROW + 1 + 7) // 8) * 8   # 264

IN_COLS = 4                         # merged input columns: [x0, x1, t, 0]

MAX_TB = 1024                       # batch-tile cap (multiple of 8)
SPLIT_THRESHOLD = 1024              # padded batch >= this -> force >= 2 grid steps


def _round_up(n, m):
    return pl.cdiv(n, m) * m


def ddpm_kernel(xt_ref, slab_ref, out_ref):
    inp = xt_ref[...]                                # (TB, 4) f32
    tb = inp.shape[0]

    x0 = inp[:, 0:1]                                 # (TB, 1)
    x1 = inp[:, 1:2]                                 # (TB, 1)
    t_i = inp[:, 2:3].astype(jnp.int32)              # (TB, 1); exact for t < 2**24

    # Lane-dense left operand: lanes 0-1 carry x_t, lanes 2..T_STEPS+1 carry
    # the one-hot of t, remaining lanes are zero.
    lane = jax.lax.broadcasted_iota(jnp.int32, (tb, LANES), 1)
    onehot = (lane == (t_i + DATA_DIM)).astype(jnp.float32)
    left = jnp.where(lane == 0, x0, jnp.where(lane == 1, x1, onehot))

    # Static slices into the packed, VMEM-resident weight slab (free).
    w1 = slab_ref[W1_ROW:W1_ROW + LANES, :]          # (128, 64)
    w2 = slab_ref[W2_ROW:W2_ROW + HIDDEN_DIM, :]     # (64, 64)
    w3 = slab_ref[W3_ROW:W3_ROW + HIDDEN_DIM, :]     # (64, 64), cols 0:2 valid
    b2 = slab_ref[B2_ROW:B2_ROW + 1, :]              # (1, 64)
    b3 = slab_ref[B3_ROW:B3_ROW + 1, :]              # (1, 64), cols 0:2 valid

    # h1 = relu(x @ W1x + onehot(t) @ (E @ W1e + b1))  -- one K=128 matmul.
    h1 = jnp.maximum(
        jnp.dot(left, w1, preferred_element_type=jnp.float32), 0.0)
    h2 = jnp.maximum(
        jnp.dot(h1, w2, preferred_element_type=jnp.float32) + b2, 0.0)
    out = jnp.dot(h2, w3, preferred_element_type=jnp.float32) + b3   # (TB, 64)
    out_ref[...] = out[:, :DATA_DIM].astype(out_ref.dtype)


def simple_ddpm_forward(x_t, t, weight_slab):
    """x_t: (B, DATA_DIM) f32, t: (B,) int -> eps_pred (B, DATA_DIM) f32."""
    B = x_t.shape[0]

    # Merge x_t and t into one pipelined (B, 4) f32 input block.
    t_col = t.astype(jnp.float32).reshape(B, 1)
    merged = jnp.concatenate(
        [x_t.astype(jnp.float32), t_col, jnp.zeros((B, 1), jnp.float32)], axis=1)

    # Batch tiling: large tiles amortize the ~0.35 us per-grid-step overhead;
    # force >= 2 steps for large batches so v7x can shard across its 2 TCs.
    b8 = _round_up(B, 8)
    tile = min(MAX_TB, b8)
    if b8 >= SPLIT_THRESHOLD:
        tile = min(tile, _round_up((b8 + 1) // 2, 8))
    b_pad = _round_up(B, tile)
    if b_pad != B:
        merged = jnp.pad(merged, ((0, b_pad - B), (0, 0)))   # pad rows: x=0, t=0

    out = pl.pallas_call(
        ddpm_kernel,
        out_shape=jax.ShapeDtypeStruct((b_pad, DATA_DIM), jnp.float32),
        grid=(b_pad // tile,),
        in_specs=[
            pl.BlockSpec((tile, IN_COLS), lambda i: (i, 0)),           # merged x/t
            pl.BlockSpec((SLAB_ROWS, HIDDEN_DIM), lambda i: (0, 0)),   # resident weights
        ],
        out_specs=pl.BlockSpec((tile, DATA_DIM), lambda i: (i, 0)),
        compiler_params=pltpu.CompilerParams(
            dimension_semantics=("parallel",)),
    )(merged, weight_slab)

    return out[:B]


def init_params(key):
    """Deterministic init matching the PyTorch module's parameter shapes."""
    ks = jax.random.split(key, 7)

    # nn.Embedding(T, H): N(0, 1)
    emb = jax.random.normal(ks[0], (T_STEPS, HIDDEN_DIM), jnp.float32)

    def linear(kw, kb, fan_in, fan_out):
        bound = 1.0 / jnp.sqrt(fan_in)
        w = jax.random.uniform(kw, (fan_in, fan_out), jnp.float32, -bound, bound)
        b = jax.random.uniform(kb, (1, fan_out), jnp.float32, -bound, bound)
        return w, b

    w1, b1 = linear(ks[1], ks[2], DATA_DIM + HIDDEN_DIM, HIDDEN_DIM)
    w2, b2 = linear(ks[3], ks[4], HIDDEN_DIM, HIDDEN_DIM)
    w3, b3 = linear(ks[5], ks[6], HIDDEN_DIM, DATA_DIM)

    w1x = w1[:DATA_DIM]          # (D, H): x_t branch of Linear1
    w1e = w1[DATA_DIM:]          # (H, H): t_emb branch of Linear1
    return (emb, w1x, w1e, b1, w2, b2, w3, b3)


def prepare_kernel_params(params):
    """Fold the embedding through Linear1's t_emb branch (exact rewrite) and
    pack all weights/biases into one zero-padded (SLAB_ROWS, HIDDEN_DIM) slab."""
    emb, w1x, w1e, b1, w2, b2, w3, b3 = params
    hp = jax.lax.Precision.HIGHEST
    emb_fused = jnp.dot(emb, w1e, precision=hp) + b1           # (T_STEPS, H)

    slab = jnp.zeros((SLAB_ROWS, HIDDEN_DIM), jnp.float32)
    slab = slab.at[W1_ROW:W1_ROW + DATA_DIM, :].set(w1x)
    slab = slab.at[W1_ROW + DATA_DIM:W1_ROW + DATA_DIM + T_STEPS, :].set(emb_fused)
    slab = slab.at[W2_ROW:W2_ROW + HIDDEN_DIM, :].set(w2)
    slab = slab.at[W3_ROW:W3_ROW + HIDDEN_DIM, :DATA_DIM].set(w3)
    slab = slab.at[B2_ROW, :].set(b2[0])
    slab = slab.at[B3_ROW, :DATA_DIM].set(b3[0])
    return slab


def reference_forward(x_t, t, params):
    """Pure-JAX reference of the PyTorch forward (highest-precision matmuls)."""
    emb, w1x, w1e, b1, w2, b2, w3, b3 = params
    hp = jax.lax.Precision.HIGHEST
    t_emb = emb[t]
    inp = jnp.concatenate([x_t, t_emb], axis=-1)
    w1 = jnp.concatenate([w1x, w1e], axis=0)
    h1 = jnp.maximum(jnp.dot(inp, w1, precision=hp) + b1, 0.0)
    h2 = jnp.maximum(jnp.dot(h1, w2, precision=hp) + b2, 0.0)
    return jnp.dot(h2, w3, precision=hp) + b3


if __name__ == "__main__":
    key = jax.random.PRNGKey(0)
    k_params, k_data = jax.random.split(key)

    params = init_params(k_params)
    weight_slab = prepare_kernel_params(params)

    ok = True
    # 13 exercises batch padding; 1100 exercises the multi-step grid and the
    # v7x ">= 2 parallel steps" tile split.
    for B in (8, 13, 1100):
        kx, kt = jax.random.split(jax.random.fold_in(k_data, B))
        x_t = jax.random.normal(kx, (B, DATA_DIM), jnp.float32)
        t = jax.random.randint(kt, (B,), 0, T_STEPS, jnp.int32)

        eps_pred = simple_ddpm_forward(x_t, t, weight_slab)
        eps_pred = jax.block_until_ready(eps_pred)

        ref = reference_forward(x_t, t, params)
        ok = ok and eps_pred.shape == (B, DATA_DIM)
        ok = ok and bool(jnp.allclose(eps_pred, ref, atol=1e-5, rtol=1e-5))

    assert ok
    print("KERNEL_OK")
</pallas_src>

<mosaic_0001>
module attributes {stable_mosaic.version = 11 : i64} {
  func.func @ddpm_kernel(%arg0: i32, %arg1: memref<8x4xf32, #tpu.memory_space<vmem>>, %arg2: memref<264x64xf32, #tpu.memory_space<vmem>>, %arg3: memref<8x2xf32, #tpu.memory_space<vmem>>) attributes {dimension_semantics = [#tpu.dimension_semantics<parallel>], iteration_bounds = array<i64: 1>, scalar_prefetch = 0 : i64, scratch_operands = 0 : i64, tpu.core_type = #tpu.core_type<tc>, window_params = [{transform_indices = @transform_0, window_bounds = array<i64: 8, 4>}, {pipeline_mode = #tpu.pipeline_mode<synchronous>, transform_indices = @transform_1, window_bounds = array<i64: 264, 64>}, {transform_indices = @transform_2, window_bounds = array<i64: 8, 2>}]} {
    %c0 = arith.constant 0 : index
    %c0_0 = arith.constant 0 : index
    %0 = vector.load %arg1[%c0, %c0_0] : memref<8x4xf32, #tpu.memory_space<vmem>>, vector<8x4xf32>
    %1 = vector.extract_strided_slice %0 {offsets = [0, 0], sizes = [8, 1], strides = [1, 1]} : vector<8x4xf32> to vector<8x1xf32>
    %2 = vector.extract_strided_slice %0 {offsets = [0, 1], sizes = [8, 1], strides = [1, 1]} : vector<8x4xf32> to vector<8x1xf32>
    %3 = vector.extract_strided_slice %0 {offsets = [0, 2], sizes = [8, 1], strides = [1, 1]} : vector<8x4xf32> to vector<8x1xf32>
    %4 = arith.fptosi %3 : vector<8x1xf32> to vector<8x1xi32>
    %5 = tpu.iota {dimensions = array<i32: 1>} : vector<8x128xi32>
    %c2_i32 = arith.constant 2 : i32
    %6 = vector.broadcast %c2_i32 : i32 to vector<8x1xi32>
    %7 = arith.addi %4, %6 : vector<8x1xi32>
    %8 = vector.broadcast %7 : vector<8x1xi32> to vector<8x128xi32>
    %9 = arith.cmpi eq, %5, %8 : vector<8x128xi32>
    %10 = arith.extui %9 : vector<8x128xi1> to vector<8x128xi32>
    %11 = arith.sitofp %10 : vector<8x128xi32> to vector<8x128xf32>
    %c0_i32 = arith.constant 0 : i32
    %12 = vector.broadcast %c0_i32 : i32 to vector<8x128xi32>
    %13 = arith.cmpi eq, %5, %12 : vector<8x128xi32>
    %c1_i32 = arith.constant 1 : i32
    %14 = vector.broadcast %c1_i32 : i32 to vector<8x128xi32>
    %15 = arith.cmpi eq, %5, %14 : vector<8x128xi32>
    %16 = vector.shape_cast %2 : vector<8x1xf32> to vector<8x1xf32>
    %17 = vector.broadcast %16 : vector<8x1xf32> to vector<8x128xf32>
    %18 = arith.select %15, %17, %11 : vector<8x128xi1>, vector<8x128xf32>
    %19 = vector.shape_cast %1 : vector<8x1xf32> to vector<8x1xf32>
    %20 = vector.broadcast %19 : vector<8x1xf32> to vector<8x128xf32>
    %21 = arith.select %13, %20, %18 : vector<8x128xi1>, vector<8x128xf32>
    %c0_1 = arith.constant 0 : index
    %c0_2 = arith.constant 0 : index
    %22 = vector.load %arg2[%c0_1, %c0_2] : memref<264x64xf32, #tpu.memory_space<vmem>>, vector<128x64xf32>
    %c128 = arith.constant 128 : index
    %c0_3 = arith.constant 0 : index
    %23 = vector.load %arg2[%c128, %c0_3] : memref<264x64xf32, #tpu.memory_space<vmem>>, vector<64x64xf32>
    %c192 = arith.constant 192 : index
    %c0_4 = arith.constant 0 : index
    %24 = vector.load %arg2[%c192, %c0_4] : memref<264x64xf32, #tpu.memory_space<vmem>>, vector<64x64xf32>
    %c256 = arith.constant 256 : index
    %c0_5 = arith.constant 0 : index
    %25 = vector.load %arg2[%c256, %c0_5] : memref<264x64xf32, #tpu.memory_space<vmem>>, vector<1x64xf32>
    %c257 = arith.constant 257 : index
    %c0_6 = arith.constant 0 : index
    %26 = vector.load %arg2[%c257, %c0_6] : memref<264x64xf32, #tpu.memory_space<vmem>>, vector<1x64xf32>
    %cst = arith.constant dense<0.000000e+00> : vector<8x64xf32>
    %27 = tpu.matmul %21, %22, %cst {dimension_numbers = #tpu.dot_dimension_numbers<[1], [0], [0], [1], [0, 0, 1, 1], [], []>} : vector<8x128xf32>, vector<128x64xf32>, vector<8x64xf32> -> vector<8x64xf32>
    %cst_7 = arith.constant 0.000000e+00 : f32
    %28 = vector.broadcast %cst_7 : f32 to vector<8x64xf32>
    %29 = arith.maximumf %27, %28 : vector<8x64xf32>
    %cst_8 = arith.constant dense<0.000000e+00> : vector<8x64xf32>
    %30 = tpu.matmul %29, %23, %cst_8 {dimension_numbers = #tpu.dot_dimension_numbers<[1], [0], [0], [1], [0, 0, 1, 1], [], []>} : vector<8x64xf32>, vector<64x64xf32>, vector<8x64xf32> -> vector<8x64xf32>
    %31 = vector.broadcast %25 : vector<1x64xf32> to vector<8x64xf32>
    %32 = arith.addf %30, %31 : vector<8x64xf32>
    %cst_9 = arith.constant 0.000000e+00 : f32
    %33 = vector.broadcast %cst_9 : f32 to vector<8x64xf32>
    %34 = arith.maximumf %32, %33 : vector<8x64xf32>
    %cst_10 = arith.constant dense<0.000000e+00> : vector<8x64xf32>
    %35 = tpu.matmul %34, %24, %cst_10 {dimension_numbers = #tpu.dot_dimension_numbers<[1], [0], [0], [1], [0, 0, 1, 1], [], []>} : vector<8x64xf32>, vector<64x64xf32>, vector<8x64xf32> -> vector<8x64xf32>
    %36 = vector.broadcast %26 : vector<1x64xf32> to vector<8x64xf32>
    %37 = arith.addf %35, %36 : vector<8x64xf32>
    %38 = vector.extract_strided_slice %37 {offsets = [0, 0], sizes = [8, 2], strides = [1, 1]} : vector<8x64xf32> to vector<8x2xf32>
    %c0_11 = arith.constant 0 : index
    %c0_12 = arith.constant 0 : index
    %39 = vector.load %arg3[%c0_11, %c0_12] : memref<8x2xf32, #tpu.memory_space<vmem>>, vector<8x2xf32>
    tpu.vector_store %arg3[%c0_11, %c0_12], %38 {strides = array<i32>} : memref<8x2xf32, #tpu.memory_space<vmem>>, vector<8x2xf32>,
    return
  }
  func.func @transform_0(%arg0: i32) -> (i32, i32) {
    %c0_i32 = arith.constant 0 : i32
    %c0_i32_0 = arith.constant 0 : i32
    return %arg0, %c0_i32 : i32, i32
  }
  func.func @transform_1(%arg0: i32) -> (i32, i32) {
    %c0_i32 = arith.constant 0 : i32
    %c0_i32_0 = arith.constant 0 : i32
    %c0_i32_1 = arith.constant 0 : i32
    return %c0_i32, %c0_i32_0 : i32, i32
  }
  func.func @transform_2(%arg0: i32) -> (i32, i32) {
    %c0_i32 = arith.constant 0 : i32
    %c0_i32_0 = arith.constant 0 : i32
    return %arg0, %c0_i32 : i32, i32
  }
}

</mosaic_0001>

<bundles_post_ra>
// kernel: tpu_custom_call.1
= control target key start
LH: loop header
LB: loop body
LE: loop exit
PB: predicated region body
PF: predicated region fallthrough
CT: control target
= control target key end

     0   :  { %v164_v0 = vmov 2   ;;  %v165_v2 = vmov 0   ;;  %v166_v17 = vmov 1   ;;  %v13_v31 = vlaneseq  ;;  %s291_s0 = inlined_call_operand.vmem [shape: f32[8,4], index: 0, kind: input, shape index: {}]   ;;  %s292_s1 = inlined_call_operand.vmem [shape: f32[264,64], index: 1, kind: input, shape index: {}]   ;;  %s293_s2 = inlined_call_operand.vmem [shape: f32[8,2], index: 2, kind: output, shape index: {}]  }
   0x1   :  { %158 = vset.pattern.permute.xlu0 %v164_v0  ;;  %v11_v1 = vld [vmem:[%s291_s0] sm:$0xff]  ;;  %160 = vset.pattern.permute.xlu1 %v165_v2  ;;  %v50_v3 = vld [vmem:[%s292_s1 + $0x78] sm:$0xff]  ;;  %v49_v4 = vld [vmem:[%s292_s1 + $0x70] sm:$0xff]  ;;  %v167_v35 = vmov 0.0   ;;  %vm91_vm4 = vcmask 523264   ;;  %vm140_vm5 = vcmask 15360  }
   0x2   :  { %vm149_vm0 = vcmp.lt.s32.totalorder %v11_v1, 0  ;;  %v150_v5 = vceil.f32 %v11_v1  ;;  %v151_v6 = vfloor.f32 %v11_v1  ;;  %31 = vperm.xlu1 %160, %v11_v1   ;;  %69 = vmatpush.msra.mxu0 %v50_v3  ;;  %v48_v7 = vld [vmem:[%s292_s1 + $0x68] sm:$0xff]  ;;  %v47_v10 = vld [vmem:[%s292_s1 + $0x60] sm:$0xff]  ;;  %v46_v12 = vld [vmem:[%s292_s1 + $0x58] sm:$0xff]  ;;  %v14_v33 = vand.u32 127, %v13_v31 }
   0x3   :  { %v45_v13 = vld [vmem:[%s292_s1 + $0x50] sm:$0xff]  ;;  %v44_v14 = vld [vmem:[%s292_s1 + $0x48] sm:$0xff]  ;;  %v43_v15 = vld [vmem:[%s292_s1 + $0x40] sm:$0xff] }
   0x4   :  { %v152_v8 = vsel %vm149_vm0, %v150_v5, %v151_v6  ;;  %70 = vmatpush.msra.mxu0 %v49_v4  ;;  %v42_v16 = vld [vmem:[%s292_s1 + $0x38] sm:$0xff]  ;;  %v41_v18 = vld [vmem:[%s292_s1 + $0x30] sm:$0xff]  ;;  %v40_v19 = vld [vmem:[%s292_s1 + $0x28] sm:$0xff]  ;;  %vm23_vm2 = vcmp.eq.s32.totalorder %v14_v33, 1  ;;  %vm22_vm3 = vcmp.eq.s32.totalorder %v14_v33, 0 }
   0x5   :  { %v153_v9 = vcvt.f32.s32 %v152_v8  ;;  %v39_v20 = vld [vmem:[%s292_s1 + $0x20] sm:$0xff]  ;;  %v38_v21 = vld [vmem:[%s292_s1 + $0x18] sm:$0xff]  ;;  %v37_v22 = vld [vmem:[%s292_s1 + $0x10] sm:$0xff] }
   0x6   :  { %71 = vmatpush.msra.mxu0 %v48_v7  ;;  %v36_v23 = vld [vmem:[%s292_s1 + $0x8] sm:$0xff]  ;;  %v35_v24 = vld [vmem:[%s292_s1] sm:$0xff]  ;;  %v58_v25 = vld [vmem:[%s292_s1 + $0xb8] sm:$0xff] }
   0x7   :  { %v15_v11 = vadd.s32 2, %v153_v9  ;;  %v57_v26 = vld [vmem:[%s292_s1 + $0xb0] sm:$0xff]  ;;  %103 = vmatpush.msra.mxu1 %v58_v25  ;;  %v56_v27 = vld [vmem:[%s292_s1 + $0xa8] sm:$0xff]  ;;  %v55_v28 = vld [vmem:[%s292_s1 + $0xa0] sm:$0xff] }
   0x8   :  { %72 = vmatpush.msra.mxu0 %v47_v10  ;;  %v54_v29 = vld [vmem:[%s292_s1 + $0x98] sm:$0xff]  ;;  %v53_v30 = vld [vmem:[%s292_s1 + $0x90] sm:$0xff]  ;;  %v52_v40 = vld [vmem:[%s292_s1 + $0x88] sm:$0xff] }
   0x9   :  { %17 = vperm.xlu0 %158, %v15_v11   ;;  %104 = vmatpush.msra.mxu1 %v57_v26  ;;  %v51_v41 = vld [vmem:[%s292_s1 + $0x80] sm:$0xff]  ;;  %v66_v42 = vld [vmem:[%s292_s1 + $0xf8] sm:$0xff]  ;;  %v65_v43 = vld [vmem:[%s292_s1 + $0xf0] sm:$0xff] }
   0xa   :  { %73 = vmatpush.msra.mxu0 %v46_v12  ;;  %128 = vmatpush.msra.mxu2 %v66_v42  ;;  %v64_v44 = vld [vmem:[%s292_s1 + $0xe8] sm:$0xff]  ;;  %v63_v45 = vld [vmem:[%s292_s1 + $0xe0] sm:$0xff]  ;;  %v62_v46 = vld [vmem:[%s292_s1 + $0xd8] sm:$0xff] }
   0xb   :  { %105 = vmatpush.msra.mxu1 %v56_v27  ;;  %v61_v49 = vld [vmem:[%s292_s1 + $0xd0] sm:$0xff]  ;;  %v60_v50 = vld [vmem:[%s292_s1 + $0xc8] sm:$0xff]  ;;  %v59_v51 = vld [vmem:[%s292_s1 + $0xc0] sm:$0xff] }
   0xc   :  { %74 = vmatpush.msra.mxu0 %v45_v13  ;;  %129 = vmatpush.msra.mxu2 %v65_v43  ;;  %v162_v52 = vld [vmem:[%s292_s1 + $0x100] ss:$0 sm:$0xff]  ;;  %v163_v56 = vld [vmem:[%s292_s1 + $0x101] ss:$0 sm:$0xff] }
   0xd   :  { %106 = vmatpush.msra.mxu1 %v55_v28 }
   0xe   :  { %75 = vmatpush.msra.mxu0 %v44_v14  ;;  %130 = vmatpush.msra.mxu2 %v64_v44 }
   0xf   :  { %107 = vmatpush.msra.mxu1 %v54_v29 }
  0x10   :  { %76 = vmatpush.msra.mxu0 %v43_v15  ;;  %131 = vmatpush.msra.mxu2 %v63_v45 }
  0x11   :  { %159 = vset.pattern.permute.xlu0 %v166_v17  ;;  %108 = vmatpush.msra.mxu1 %v53_v30 }
  0x12   :  { %26 = vperm.xlu0 %159, %v11_v1   ;;  %77 = vmatpush.msra.mxu0 %v42_v16 }
  0x13   :  { %109 = vmatpush.msra.mxu1 %v52_v40  ;;  %132 = vmatpush.msra.mxu2 %v62_v46 }
  0x14   :  { %78 = vmatpush.msra.mxu0 %v41_v18 }
  0x15   :  { %110 = vmatpush.msra.mxu1 %v51_v41  ;;  %133 = vmatpush.msra.mxu2 %v61_v49 }
  0x16   :  { %79 = vmatpush.msra.mxu0 %v40_v19 }
  0x17   :  { %134 = vmatpush.msra.mxu2 %v60_v50 }
  0x18   :  { %80 = vmatpush.msra.mxu0 %v39_v20 }
  0x19   :  { %135 = vmatpush.msra.mxu2 %v59_v51 }
  0x1a   :  { %161 = vset.pattern.permute.xlu0 %v165_v2  ;;  %81 = vmatpush.msra.mxu0 %v38_v21 }
  0x1c   :  { %82 = vmatpush.msra.mxu0 %v37_v22 }
  0x1e   :  { %83 = vmatpush.msra.mxu0 %v36_v23 }
  0x20   :  { %84 = vmatpush.msra.mxu0 %v35_v24 }
  0x74   :  { %v32_v34 = vpop.permute.xlu1 %31 }
  0x7b   :  { %v18_v32 = vpop.permute.xlu0 %17 }
  0x7c   :  { %vm19_vm1 = vcmp.eq.s32.totalorder %v14_v33, %v18_v32 }
  0x7d   :  { %v146_v36 = vsel %vm19_vm1, 1.0, %v167_v35 }
  0x84   :  { %v27_v37 = vpop.permute.xlu0 %26 }
  0x85   :  { %v29_v38 = vsel %vm23_vm2, %v27_v37, %v146_v36 }
  0x86   :  { %v34_v39 = vsel %vm22_vm3, %v32_v34, %v29_v38 }
  0x87   :  { %85 = vmatmul.f32.vlgmr.msra.gmra.mxu0 %v34_v39 }
 0x104   :  { %v86_v47 = vpop.f32.mrf.mxu0 }
 0x105   :  { %v89_v48 = vmax.f32 %v86_v47, 0.0 }
 0x107   :  { %147 = vmatmul.msk.f32.vlgmr.msra.gmra.mxu1 %vm91_vm4, %v89_v48 }
 0x184   :  { %v112_v53 = vpop.f32.mrf.mxu1 }
 0x185   :  { %v113_v54 = vadd.f32 %v162_v52, %v112_v53 }
 0x187   :  { %v115_v55 = vmax.f32 %v113_v54, 0.0 }
 0x189   :  { %148 = vmatmul.msk.f32.vlgmr.msra.gmra.mxu2 %vm91_vm4, %v115_v55 }
 0x20c   :  { %v137_v57 = vpop.f32.mrf.mxu2 }
 0x20d   :  { %v138_v58 = vadd.f32 %v163_v56, %v137_v57 }
 0x20f   :  { %141 = vst.msk [vmem:[%s293_s2] sm:$0xff] %vm140_vm5, %v138_v58 }

</bundles_post_ra>
